<compile_context>
chip_gen: v6e
topology: v6e:2x2x1
jax: 0.10.0
libtpu: 0.0.40
codegen_flags: <defaults>
</compile_context>

<pallas_src>
import numpy as np
import jax
import jax.numpy as jnp
from jax import lax
from jax.experimental import pallas as pl
from jax.experimental.pallas import tpu as pltpu


# ----------------------------------------------------------------------------
# Pallas kernel: the full decoder loop in one invocation (no MXU on the chain).
# ----------------------------------------------------------------------------
def _decoder_kernel(
    ntf_ref,      # SMEM (T,)   f32 : 1 - tf[t-1] (ntf[0] = 0); feedback coefficient
    bfc_ref,      # SMEM (1,)   f32 : fc bias (target_size == 1)
    gpre_ref,     # VMEM (T, B, 4H) : precomputed gate pre-activations (covariate+gh[+tf tgt])
    c0_ref,       # VMEM (B, H)     : encoder cell state (reused every step)
    w_last_ref,   # VMEM (1, 4H)    : last row of fused W_ih (autoregressive feature)
    w_fc_ref,     # VMEM (1, H)     : fc weight row (w_fc.T)
    out_ref,      # VMEM (B, T)     : outputs, lane-dense, written once
):
    B, H = c0_ref.shape
    T = gpre_ref.shape[0]

    # Loop-invariant loads / constants (hoisted out of the time loop).
    c0 = c0_ref[...]                                    # (B, H)
    w_last = w_last_ref[...]                            # (1, 4H)
    w_fc_row = w_fc_ref[...]                            # (1, H)
    b_fc = bfc_ref[0]                                   # scalar

    lane4 = lax.broadcasted_iota(jnp.int32, (B, 4 * H), 1)
    g_mask = jnp.logical_and(lane4 >= 2 * H, lane4 < 3 * H)   # tanh region
    out_lane = lax.broadcasted_iota(jnp.int32, (B, T), 1)

    def step(t, carry):
        out_prev, acc = carry
        # Autoregressive last-feature contribution (zero on teacher-forced steps).
        fed = ntf_ref[t] * out_prev                      # (B, 1)
        gates = gpre_ref[t] + fed * w_last               # (B, 4H), VPU only

        # 2 full-vreg EUP pushes; pick the g-gate (tanh) region with a lane mask.
        sg = jax.nn.sigmoid(gates)
        tg = jnp.tanh(gates)
        act = jnp.where(g_mask, tg, sg)
        i_g = act[:, 0 * H:1 * H]
        f_g = act[:, 1 * H:2 * H]
        c_g = act[:, 2 * H:3 * H]
        o_g = act[:, 3 * H:4 * H]

        c = f_g * c0 + i_g * c_g
        h = o_g * jnp.tanh(c)

        # fc head as VPU multiply + cross-lane reduce (no MXU round trip).
        out = jnp.sum(h * w_fc_row, axis=-1, keepdims=True) + b_fc   # (B, 1)

        # Accumulate into the lane-dense (B, T) carry; stored once after loop.
        acc = jnp.where(out_lane == t, out, acc)
        return out, acc

    init = (jnp.zeros((B, 1), jnp.float32), jnp.zeros((B, T), jnp.float32))
    _, acc = lax.fori_loop(0, T, step, init, unroll=True)
    out_ref[...] = acc.astype(out_ref.dtype)


# ----------------------------------------------------------------------------
# Wrapper
# ----------------------------------------------------------------------------
def decoder_forward(input_init, encoder_hidden, targets, tf_mask, params):
    """input_init (B, L0, F0); encoder_hidden = (h0, c0) each (1, B, H);
    targets (B, T, D_in); tf_mask (T,) int32; returns (B, T, target_size)."""
    w_ih, w_hh, b_g, w_fc, b_fc = params
    h0 = encoder_hidden[0][0].astype(jnp.float32)        # (B, H)
    c0 = encoder_hidden[1][0].astype(jnp.float32)        # (B, H)
    B, T, d_in = targets.shape
    H = h0.shape[-1]
    t_out = w_fc.shape[-1]
    # The non-teacher-forcing path of the original module only makes sense for
    # target_size == 1 (out is concatenated as the last input feature).
    assert t_out == 1, "Decoder non-teacher-forcing path requires target_size == 1"

    # Fuse the 4 gates along the lane dimension (gate order i, f, g, o).
    w_ih_f = jnp.concatenate([w_ih[0], w_ih[1], w_ih[2], w_ih[3]], axis=-1)  # (D_in,4H)
    w_hh_f = jnp.concatenate([w_hh[0], w_hh[1], w_hh[2], w_hh[3]], axis=-1)  # (H,4H)
    b_f = jnp.concatenate([b_g[0], b_g[1], b_g[2], b_g[3]], axis=-1)         # (1,4H)

    # encoder_hidden is re-used every step -> its gate contribution is constant.
    gh = h0 @ w_hh_f + b_f                                                   # (B,4H)

    # Step-0 input: input_init[:, -1, -decoder_input_size:]
    x0 = input_init[:, -1, -d_in:].astype(jnp.float32)                       # (B,D_in)
    tgt = targets.astype(jnp.float32)
    tf_f = tf_mask.astype(jnp.float32)                                       # (T,)

    # Precompute the input-side gate contributions for ALL steps as one matmul:
    #   x_pre[0]   = x0 (full)
    #   x_pre[t>0] = [ targets[:, t-1, :-1],  tf[t-1] * targets[:, t-1, -1] ]
    # The kernel adds only the autoregressive term ntf[t] * out_{t-1} * w_ih_last.
    tgt_masked = jnp.concatenate(
        [tgt[:, :, :d_in - 1], tgt[:, :, d_in - 1:] * tf_f[None, :, None]], axis=-1)
    tgt_masked_tm = jnp.transpose(tgt_masked, (1, 0, 2))                     # (T,B,D_in)
    x_pre = jnp.concatenate([x0[None], tgt_masked_tm[: T - 1]], axis=0)      # (T,B,D_in)
    g_pre = (x_pre.reshape(T * B, d_in) @ w_ih_f).reshape(T, B, 4 * H) + gh[None]

    # ntf[0] = 0 (step 0 uses x0 fully); ntf[t] = 1 - tf[t-1] for t >= 1.
    ntf = jnp.concatenate([jnp.zeros((1,), jnp.float32), 1.0 - tf_f[: T - 1]])

    w_last = w_ih_f[d_in - 1:d_in, :].astype(jnp.float32)                    # (1,4H)
    w_fc_row = jnp.transpose(w_fc).astype(jnp.float32)                       # (1,H)
    b_fc_s = jnp.reshape(b_fc, (1,)).astype(jnp.float32)                     # (1,)

    vmem = pl.BlockSpec(memory_space=pltpu.MemorySpace.VMEM)
    smem = pl.BlockSpec(memory_space=pltpu.MemorySpace.SMEM)

    out = pl.pallas_call(
        _decoder_kernel,
        out_shape=jax.ShapeDtypeStruct((B, T), jnp.float32),
        in_specs=[
            smem,   # ntf
            smem,   # b_fc
            vmem,   # g_pre
            vmem,   # c0
            vmem,   # w_ih last row
            vmem,   # w_fc row
        ],
        out_specs=vmem,
    )(ntf, b_fc_s, g_pre.astype(jnp.float32), c0, w_last, w_fc_row)

    # TODO(synk): if batch grows on v7x, add a leading batch grid axis with
    # dimension_semantics=("parallel",) so both TensorCores run the serial loop.
    return out.reshape(B, T, 1)


# ----------------------------------------------------------------------------
# Pure-JAX reference (mirrors the PyTorch forward step by step)
# ----------------------------------------------------------------------------
def decoder_reference(input_init, encoder_hidden, targets, tf_mask, params):
    w_ih, w_hh, b_g, w_fc, b_fc = params
    h0 = encoder_hidden[0][0]
    c0 = encoder_hidden[1][0]
    B, T, d_in = targets.shape
    gh = [h0 @ w_hh[k] + b_g[k] for k in range(4)]
    x = input_init[:, -1, -d_in:]
    outs = []
    tf_host = np.asarray(tf_mask)
    for t in range(T):
        i = jax.nn.sigmoid(x @ w_ih[0] + gh[0])
        f = jax.nn.sigmoid(x @ w_ih[1] + gh[1])
        g = jnp.tanh(x @ w_ih[2] + gh[2])
        o = jax.nn.sigmoid(x @ w_ih[3] + gh[3])
        c = f * c0 + i * g
        h = o * jnp.tanh(c)
        out = h @ w_fc + b_fc
        outs.append(out)
        tgt_t = targets[:, t, :]
        if tf_host[t]:
            x = tgt_t
        else:
            x = jnp.concatenate([tgt_t[:, : d_in - 1], out], axis=-1)
    return jnp.stack(outs, axis=1)


# ----------------------------------------------------------------------------
if __name__ == "__main__":
    # Small, module-consistent shapes.
    B = 2                    # batch
    L0, F0 = 3, 10           # input_init sequence length / feature width
    D_IN = 8                 # decoder_input_size (== targets feature size)
    H = 32                   # hidden_size (4H = 128 -> lane-dense fused gates)
    T_OUT = 1                # target_size (required for non-teacher-forcing path)
    T = 8                    # pred_len
    TF_PROB = 0.75

    key = jax.random.PRNGKey(0)
    ks = jax.random.split(key, 10)
    scale = 1.0 / np.sqrt(H)

    # Deterministic synthetic parameters (gate order i, f, g, o).
    w_ih = jax.random.uniform(ks[0], (4, D_IN, H), jnp.float32, -scale, scale)
    w_hh = jax.random.uniform(ks[1], (4, H, H), jnp.float32, -scale, scale)
    b_ih = jax.random.uniform(ks[2], (4, 1, H), jnp.float32, -scale, scale)
    b_hh = jax.random.uniform(ks[3], (4, 1, H), jnp.float32, -scale, scale)
    b_g = b_ih + b_hh
    w_fc = jax.random.uniform(ks[4], (H, T_OUT), jnp.float32, -scale, scale)
    b_fc = jax.random.uniform(ks[5], (1, T_OUT), jnp.float32, -scale, scale)
    params = (w_ih, w_hh, b_g, w_fc, b_fc)

    # Deterministic synthetic inputs.
    input_init = jax.random.normal(ks[6], (B, L0, F0), jnp.float32)
    h0 = jax.random.normal(ks[7], (1, B, H), jnp.float32)
    c0 = jax.random.normal(ks[8], (1, B, H), jnp.float32)
    targets = jax.random.normal(ks[9], (B, T, D_IN), jnp.float32)

    # Deterministic teacher-forcing coin flips (stand-in for random.random()).
    rng = np.random.RandomState(0)
    tf_mask = jnp.asarray((rng.rand(T) < TF_PROB).astype(np.int32))

    out = decoder_forward(input_init, (h0, c0), targets, tf_mask, params)
    out = jax.block_until_ready(out)

    ref = decoder_reference(input_init, (h0, c0), targets, tf_mask, params)
    assert out.shape == (B, T, T_OUT)
    np.testing.assert_allclose(np.asarray(out), np.asarray(ref),
                               rtol=1e-5, atol=1e-5)
    print("KERNEL_OK")
</pallas_src>

<mosaic_0001>
module attributes {stable_mosaic.version = 11 : i64} {
  func.func @_decoder_kernel(%arg0: memref<8xf32, #tpu.memory_space<smem>>, %arg1: memref<1xf32, #tpu.memory_space<smem>>, %arg2: memref<8x2x128xf32, #tpu.memory_space<vmem>>, %arg3: memref<2x32xf32, #tpu.memory_space<vmem>>, %arg4: memref<1x128xf32, #tpu.memory_space<vmem>>, %arg5: memref<1x32xf32, #tpu.memory_space<vmem>>, %arg6: memref<2x8xf32, #tpu.memory_space<vmem>>) attributes {dimension_semantics = [], scalar_prefetch = 0 : i64, scratch_operands = 0 : i64, tpu.core_type = #tpu.core_type<tc>} {
    %c0 = arith.constant 0 : index
    %c0_0 = arith.constant 0 : index
    %0 = vector.load %arg3[%c0, %c0_0] : memref<2x32xf32, #tpu.memory_space<vmem>>, vector<2x32xf32>
    %c0_1 = arith.constant 0 : index
    %c0_2 = arith.constant 0 : index
    %1 = vector.load %arg4[%c0_1, %c0_2] : memref<1x128xf32, #tpu.memory_space<vmem>>, vector<1x128xf32>
    %c0_3 = arith.constant 0 : index
    %c0_4 = arith.constant 0 : index
    %2 = vector.load %arg5[%c0_3, %c0_4] : memref<1x32xf32, #tpu.memory_space<vmem>>, vector<1x32xf32>
    %c0_5 = arith.constant 0 : index
    %3 = memref.load %arg1[%c0_5] : memref<1xf32, #tpu.memory_space<smem>>
    %4 = tpu.iota {dimensions = array<i32: 1>} : vector<2x128xi32>
    %c64_i32 = arith.constant 64 : i32
    %5 = vector.broadcast %c64_i32 : i32 to vector<2x128xi32>
    %6 = arith.cmpi sge, %4, %5 : vector<2x128xi32>
    %c96_i32 = arith.constant 96 : i32
    %7 = vector.broadcast %c96_i32 : i32 to vector<2x128xi32>
    %8 = arith.cmpi slt, %4, %7 : vector<2x128xi32>
    %9 = arith.andi %6, %8 : vector<2x128xi1>
    %10 = tpu.iota {dimensions = array<i32: 1>} : vector<2x8xi32>
    %cst = arith.constant 0.000000e+00 : f32
    %11 = vector.broadcast %cst : f32 to vector<2x1xf32>
    %cst_6 = arith.constant 0.000000e+00 : f32
    %12 = vector.broadcast %cst_6 : f32 to vector<2x8xf32>
    %c0_i32 = arith.constant 0 : i32
    %13 = arith.index_cast %c0_i32 : i32 to index
    %14 = memref.load %arg0[%13] : memref<8xf32, #tpu.memory_space<smem>>
    %15 = vector.broadcast %14 : f32 to vector<2x1xf32>
    %16 = arith.mulf %15, %11 : vector<2x1xf32>
    %17 = arith.index_cast %c0_i32 : i32 to index
    %c0_7 = arith.constant 0 : index
    %c0_8 = arith.constant 0 : index
    %18 = vector.load %arg2[%17, %c0_7, %c0_8] : memref<8x2x128xf32, #tpu.memory_space<vmem>>, vector<1x2x128xf32>
    %19 = vector.shape_cast %18 : vector<1x2x128xf32> to vector<2x128xf32>
    %20 = vector.broadcast %16 : vector<2x1xf32> to vector<2x128xf32>
    %21 = vector.broadcast %1 : vector<1x128xf32> to vector<2x128xf32>
    %22 = arith.mulf %20, %21 : vector<2x128xf32>
    %23 = arith.addf %19, %22 : vector<2x128xf32>
    %24 = arith.negf %23 : vector<2x128xf32>
    %25 = math.exp %24 : vector<2x128xf32>
    %cst_9 = arith.constant 1.000000e+00 : f32
    %26 = vector.broadcast %cst_9 : f32 to vector<2x128xf32>
    %27 = arith.addf %26, %25 : vector<2x128xf32>
    %28 = arith.divf %26, %27 : vector<2x128xf32>
    %29 = math.tanh %23 : vector<2x128xf32>
    %30 = arith.select %9, %29, %28 : vector<2x128xi1>, vector<2x128xf32>
    %31 = vector.extract_strided_slice %30 {offsets = [0, 0], sizes = [2, 32], strides = [1, 1]} : vector<2x128xf32> to vector<2x32xf32>
    %32 = vector.extract_strided_slice %30 {offsets = [0, 32], sizes = [2, 32], strides = [1, 1]} : vector<2x128xf32> to vector<2x32xf32>
    %33 = vector.extract_strided_slice %30 {offsets = [0, 64], sizes = [2, 32], strides = [1, 1]} : vector<2x128xf32> to vector<2x32xf32>
    %34 = vector.extract_strided_slice %30 {offsets = [0, 96], sizes = [2, 32], strides = [1, 1]} : vector<2x128xf32> to vector<2x32xf32>
    %35 = arith.mulf %32, %0 : vector<2x32xf32>
    %36 = arith.mulf %31, %33 : vector<2x32xf32>
    %37 = arith.addf %35, %36 : vector<2x32xf32>
    %38 = math.tanh %37 : vector<2x32xf32>
    %39 = arith.mulf %34, %38 : vector<2x32xf32>
    %40 = vector.broadcast %2 : vector<1x32xf32> to vector<2x32xf32>
    %41 = arith.mulf %39, %40 : vector<2x32xf32>
    %cst_10 = arith.constant dense<0.000000e+00> : vector<2xf32>
    %42 = vector.multi_reduction <add>, %41, %cst_10 [1] : vector<2x32xf32> to vector<2xf32>
    %43 = vector.shape_cast %42 : vector<2xf32> to vector<2x1xf32>
    %44 = vector.broadcast %3 : f32 to vector<2x1xf32>
    %45 = arith.addf %43, %44 : vector<2x1xf32>
    %46 = vector.broadcast %c0_i32 : i32 to vector<2x8xi32>
    %47 = arith.cmpi eq, %10, %46 : vector<2x8xi32>
    %48 = vector.shape_cast %45 : vector<2x1xf32> to vector<2x1xf32>
    %49 = vector.broadcast %48 : vector<2x1xf32> to vector<2x8xf32>
    %50 = arith.select %47, %49, %12 : vector<2x8xi1>, vector<2x8xf32>
    %c1_i32 = arith.constant 1 : i32
    %51 = arith.index_cast %c1_i32 : i32 to index
    %52 = memref.load %arg0[%51] : memref<8xf32, #tpu.memory_space<smem>>
    %53 = vector.broadcast %52 : f32 to vector<2x1xf32>
    %54 = arith.mulf %53, %45 : vector<2x1xf32>
    %55 = arith.index_cast %c1_i32 : i32 to index
    %c0_11 = arith.constant 0 : index
    %c0_12 = arith.constant 0 : index
    %56 = vector.load %arg2[%55, %c0_11, %c0_12] : memref<8x2x128xf32, #tpu.memory_space<vmem>>, vector<1x2x128xf32>
    %57 = vector.shape_cast %56 : vector<1x2x128xf32> to vector<2x128xf32>
    %58 = vector.broadcast %54 : vector<2x1xf32> to vector<2x128xf32>
    %59 = vector.broadcast %1 : vector<1x128xf32> to vector<2x128xf32>
    %60 = arith.mulf %58, %59 : vector<2x128xf32>
    %61 = arith.addf %57, %60 : vector<2x128xf32>
    %62 = arith.negf %61 : vector<2x128xf32>
    %63 = math.exp %62 : vector<2x128xf32>
    %cst_13 = arith.constant 1.000000e+00 : f32
    %64 = vector.broadcast %cst_13 : f32 to vector<2x128xf32>
    %65 = arith.addf %64, %63 : vector<2x128xf32>
    %66 = arith.divf %64, %65 : vector<2x128xf32>
    %67 = math.tanh %61 : vector<2x128xf32>
    %68 = arith.select %9, %67, %66 : vector<2x128xi1>, vector<2x128xf32>
    %69 = vector.extract_strided_slice %68 {offsets = [0, 0], sizes = [2, 32], strides = [1, 1]} : vector<2x128xf32> to vector<2x32xf32>
    %70 = vector.extract_strided_slice %68 {offsets = [0, 32], sizes = [2, 32], strides = [1, 1]} : vector<2x128xf32> to vector<2x32xf32>
    %71 = vector.extract_strided_slice %68 {offsets = [0, 64], sizes = [2, 32], strides = [1, 1]} : vector<2x128xf32> to vector<2x32xf32>
    %72 = vector.extract_strided_slice %68 {offsets = [0, 96], sizes = [2, 32], strides = [1, 1]} : vector<2x128xf32> to vector<2x32xf32>
    %73 = arith.mulf %70, %0 : vector<2x32xf32>
    %74 = arith.mulf %69, %71 : vector<2x32xf32>
    %75 = arith.addf %73, %74 : vector<2x32xf32>
    %76 = math.tanh %75 : vector<2x32xf32>
    %77 = arith.mulf %72, %76 : vector<2x32xf32>
    %78 = vector.broadcast %2 : vector<1x32xf32> to vector<2x32xf32>
    %79 = arith.mulf %77, %78 : vector<2x32xf32>
    %cst_14 = arith.constant dense<0.000000e+00> : vector<2xf32>
    %80 = vector.multi_reduction <add>, %79, %cst_14 [1] : vector<2x32xf32> to vector<2xf32>
    %81 = vector.shape_cast %80 : vector<2xf32> to vector<2x1xf32>
    %82 = vector.broadcast %3 : f32 to vector<2x1xf32>
    %83 = arith.addf %81, %82 : vector<2x1xf32>
    %84 = vector.broadcast %c1_i32 : i32 to vector<2x8xi32>
    %85 = arith.cmpi eq, %10, %84 : vector<2x8xi32>
    %86 = vector.shape_cast %83 : vector<2x1xf32> to vector<2x1xf32>
    %87 = vector.broadcast %86 : vector<2x1xf32> to vector<2x8xf32>
    %88 = arith.select %85, %87, %50 : vector<2x8xi1>, vector<2x8xf32>
    %c2_i32 = arith.constant 2 : i32
    %89 = arith.index_cast %c2_i32 : i32 to index
    %90 = memref.load %arg0[%89] : memref<8xf32, #tpu.memory_space<smem>>
    %91 = vector.broadcast %90 : f32 to vector<2x1xf32>
    %92 = arith.mulf %91, %83 : vector<2x1xf32>
    %93 = arith.index_cast %c2_i32 : i32 to index
    %c0_15 = arith.constant 0 : index
    %c0_16 = arith.constant 0 : index
    %94 = vector.load %arg2[%93, %c0_15, %c0_16] : memref<8x2x128xf32, #tpu.memory_space<vmem>>, vector<1x2x128xf32>
    %95 = vector.shape_cast %94 : vector<1x2x128xf32> to vector<2x128xf32>
    %96 = vector.broadcast %92 : vector<2x1xf32> to vector<2x128xf32>
    %97 = vector.broadcast %1 : vector<1x128xf32> to vector<2x128xf32>
    %98 = arith.mulf %96, %97 : vector<2x128xf32>
    %99 = arith.addf %95, %98 : vector<2x128xf32>
    %100 = arith.negf %99 : vector<2x128xf32>
    %101 = math.exp %100 : vector<2x128xf32>
    %cst_17 = arith.constant 1.000000e+00 : f32
    %102 = vector.broadcast %cst_17 : f32 to vector<2x128xf32>
    %103 = arith.addf %102, %101 : vector<2x128xf32>
    %104 = arith.divf %102, %103 : vector<2x128xf32>
    %105 = math.tanh %99 : vector<2x128xf32>
    %106 = arith.select %9, %105, %104 : vector<2x128xi1>, vector<2x128xf32>
    %107 = vector.extract_strided_slice %106 {offsets = [0, 0], sizes = [2, 32], strides = [1, 1]} : vector<2x128xf32> to vector<2x32xf32>
    %108 = vector.extract_strided_slice %106 {offsets = [0, 32], sizes = [2, 32], strides = [1, 1]} : vector<2x128xf32> to vector<2x32xf32>
    %109 = vector.extract_strided_slice %106 {offsets = [0, 64], sizes = [2, 32], strides = [1, 1]} : vector<2x128xf32> to vector<2x32xf32>
    %110 = vector.extract_strided_slice %106 {offsets = [0, 96], sizes = [2, 32], strides = [1, 1]} : vector<2x128xf32> to vector<2x32xf32>
    %111 = arith.mulf %108, %0 : vector<2x32xf32>
    %112 = arith.mulf %107, %109 : vector<2x32xf32>
    %113 = arith.addf %111, %112 : vector<2x32xf32>
    %114 = math.tanh %113 : vector<2x32xf32>
    %115 = arith.mulf %110, %114 : vector<2x32xf32>
    %116 = vector.broadcast %2 : vector<1x32xf32> to vector<2x32xf32>
    %117 = arith.mulf %115, %116 : vector<2x32xf32>
    %cst_18 = arith.constant dense<0.000000e+00> : vector<2xf32>
    %118 = vector.multi_reduction <add>, %117, %cst_18 [1] : vector<2x32xf32> to vector<2xf32>
    %119 = vector.shape_cast %118 : vector<2xf32> to vector<2x1xf32>
    %120 = vector.broadcast %3 : f32 to vector<2x1xf32>
    %121 = arith.addf %119, %120 : vector<2x1xf32>
    %122 = vector.broadcast %c2_i32 : i32 to vector<2x8xi32>
    %123 = arith.cmpi eq, %10, %122 : vector<2x8xi32>
    %124 = vector.shape_cast %121 : vector<2x1xf32> to vector<2x1xf32>
    %125 = vector.broadcast %124 : vector<2x1xf32> to vector<2x8xf32>
    %126 = arith.select %123, %125, %88 : vector<2x8xi1>, vector<2x8xf32>
    %c3_i32 = arith.constant 3 : i32
    %127 = arith.index_cast %c3_i32 : i32 to index
    %128 = memref.load %arg0[%127] : memref<8xf32, #tpu.memory_space<smem>>
    %129 = vector.broadcast %128 : f32 to vector<2x1xf32>
    %130 = arith.mulf %129, %121 : vector<2x1xf32>
    %131 = arith.index_cast %c3_i32 : i32 to index
    %c0_19 = arith.constant 0 : index
    %c0_20 = arith.constant 0 : index
    %132 = vector.load %arg2[%131, %c0_19, %c0_20] : memref<8x2x128xf32, #tpu.memory_space<vmem>>, vector<1x2x128xf32>
    %133 = vector.shape_cast %132 : vector<1x2x128xf32> to vector<2x128xf32>
    %134 = vector.broadcast %130 : vector<2x1xf32> to vector<2x128xf32>
    %135 = vector.broadcast %1 : vector<1x128xf32> to vector<2x128xf32>
    %136 = arith.mulf %134, %135 : vector<2x128xf32>
    %137 = arith.addf %133, %136 : vector<2x128xf32>
    %138 = arith.negf %137 : vector<2x128xf32>
    %139 = math.exp %138 : vector<2x128xf32>
    %cst_21 = arith.constant 1.000000e+00 : f32
    %140 = vector.broadcast %cst_21 : f32 to vector<2x128xf32>
    %141 = arith.addf %140, %139 : vector<2x128xf32>
    %142 = arith.divf %140, %141 : vector<2x128xf32>
    %143 = math.tanh %137 : vector<2x128xf32>
    %144 = arith.select %9, %143, %142 : vector<2x128xi1>, vector<2x128xf32>
    %145 = vector.extract_strided_slice %144 {offsets = [0, 0], sizes = [2, 32], strides = [1, 1]} : vector<2x128xf32> to vector<2x32xf32>
    %146 = vector.extract_strided_slice %144 {offsets = [0, 32], sizes = [2, 32], strides = [1, 1]} : vector<2x128xf32> to vector<2x32xf32>
    %147 = vector.extract_strided_slice %144 {offsets = [0, 64], sizes = [2, 32], strides = [1, 1]} : vector<2x128xf32> to vector<2x32xf32>
    %148 = vector.extract_strided_slice %144 {offsets = [0, 96], sizes = [2, 32], strides = [1, 1]} : vector<2x128xf32> to vector<2x32xf32>
    %149 = arith.mulf %146, %0 : vector<2x32xf32>
    %150 = arith.mulf %145, %147 : vector<2x32xf32>
    %151 = arith.addf %149, %150 : vector<2x32xf32>
    %152 = math.tanh %151 : vector<2x32xf32>
    %153 = arith.mulf %148, %152 : vector<2x32xf32>
    %154 = vector.broadcast %2 : vector<1x32xf32> to vector<2x32xf32>
    %155 = arith.mulf %153, %154 : vector<2x32xf32>
    %cst_22 = arith.constant dense<0.000000e+00> : vector<2xf32>
    %156 = vector.multi_reduction <add>, %155, %cst_22 [1] : vector<2x32xf32> to vector<2xf32>
    %157 = vector.shape_cast %156 : vector<2xf32> to vector<2x1xf32>
    %158 = vector.broadcast %3 : f32 to vector<2x1xf32>
    %159 = arith.addf %157, %158 : vector<2x1xf32>
    %160 = vector.broadcast %c3_i32 : i32 to vector<2x8xi32>
    %161 = arith.cmpi eq, %10, %160 : vector<2x8xi32>
    %162 = vector.shape_cast %159 : vector<2x1xf32> to vector<2x1xf32>
    %163 = vector.broadcast %162 : vector<2x1xf32> to vector<2x8xf32>
    %164 = arith.select %161, %163, %126 : vector<2x8xi1>, vector<2x8xf32>
    %c4_i32 = arith.constant 4 : i32
    %165 = arith.index_cast %c4_i32 : i32 to index
    %166 = memref.load %arg0[%165] : memref<8xf32, #tpu.memory_space<smem>>
    %167 = vector.broadcast %166 : f32 to vector<2x1xf32>
    %168 = arith.mulf %167, %159 : vector<2x1xf32>
    %169 = arith.index_cast %c4_i32 : i32 to index
    %c0_23 = arith.constant 0 : index
    %c0_24 = arith.constant 0 : index
    %170 = vector.load %arg2[%169, %c0_23, %c0_24] : memref<8x2x128xf32, #tpu.memory_space<vmem>>, vector<1x2x128xf32>
    %171 = vector.shape_cast %170 : vector<1x2x128xf32> to vector<2x128xf32>
    %172 = vector.broadcast %168 : vector<2x1xf32> to vector<2x128xf32>
    %173 = vector.broadcast %1 : vector<1x128xf32> to vector<2x128xf32>
    %174 = arith.mulf %172, %173 : vector<2x128xf32>
    %175 = arith.addf %171, %174 : vector<2x128xf32>
    %176 = arith.negf %175 : vector<2x128xf32>
    %177 = math.exp %176 : vector<2x128xf32>
    %cst_25 = arith.constant 1.000000e+00 : f32
    %178 = vector.broadcast %cst_25 : f32 to vector<2x128xf32>
    %179 = arith.addf %178, %177 : vector<2x128xf32>
    %180 = arith.divf %178, %179 : vector<2x128xf32>
    %181 = math.tanh %175 : vector<2x128xf32>
    %182 = arith.select %9, %181, %180 : vector<2x128xi1>, vector<2x128xf32>
    %183 = vector.extract_strided_slice %182 {offsets = [0, 0], sizes = [2, 32], strides = [1, 1]} : vector<2x128xf32> to vector<2x32xf32>
    %184 = vector.extract_strided_slice %182 {offsets = [0, 32], sizes = [2, 32], strides = [1, 1]} : vector<2x128xf32> to vector<2x32xf32>
    %185 = vector.extract_strided_slice %182 {offsets = [0, 64], sizes = [2, 32], strides = [1, 1]} : vector<2x128xf32> to vector<2x32xf32>
    %186 = vector.extract_strided_slice %182 {offsets = [0, 96], sizes = [2, 32], strides = [1, 1]} : vector<2x128xf32> to vector<2x32xf32>
    %187 = arith.mulf %184, %0 : vector<2x32xf32>
    %188 = arith.mulf %183, %185 : vector<2x32xf32>
    %189 = arith.addf %187, %188 : vector<2x32xf32>
    %190 = math.tanh %189 : vector<2x32xf32>
    %191 = arith.mulf %186, %190 : vector<2x32xf32>
    %192 = vector.broadcast %2 : vector<1x32xf32> to vector<2x32xf32>
    %193 = arith.mulf %191, %192 : vector<2x32xf32>
    %cst_26 = arith.constant dense<0.000000e+00> : vector<2xf32>
    %194 = vector.multi_reduction <add>, %193, %cst_26 [1] : vector<2x32xf32> to vector<2xf32>
    %195 = vector.shape_cast %194 : vector<2xf32> to vector<2x1xf32>
    %196 = vector.broadcast %3 : f32 to vector<2x1xf32>
    %197 = arith.addf %195, %196 : vector<2x1xf32>
    %198 = vector.broadcast %c4_i32 : i32 to vector<2x8xi32>
    %199 = arith.cmpi eq, %10, %198 : vector<2x8xi32>
    %200 = vector.shape_cast %197 : vector<2x1xf32> to vector<2x1xf32>
    %201 = vector.broadcast %200 : vector<2x1xf32> to vector<2x8xf32>
    %202 = arith.select %199, %201, %164 : vector<2x8xi1>, vector<2x8xf32>
    %c5_i32 = arith.constant 5 : i32
    %203 = arith.index_cast %c5_i32 : i32 to index
    %204 = memref.load %arg0[%203] : memref<8xf32, #tpu.memory_space<smem>>
    %205 = vector.broadcast %204 : f32 to vector<2x1xf32>
    %206 = arith.mulf %205, %197 : vector<2x1xf32>
    %207 = arith.index_cast %c5_i32 : i32 to index
    %c0_27 = arith.constant 0 : index
    %c0_28 = arith.constant 0 : index
    %208 = vector.load %arg2[%207, %c0_27, %c0_28] : memref<8x2x128xf32, #tpu.memory_space<vmem>>, vector<1x2x128xf32>
    %209 = vector.shape_cast %208 : vector<1x2x128xf32> to vector<2x128xf32>
    %210 = vector.broadcast %206 : vector<2x1xf32> to vector<2x128xf32>
    %211 = vector.broadcast %1 : vector<1x128xf32> to vector<2x128xf32>
    %212 = arith.mulf %210, %211 : vector<2x128xf32>
    %213 = arith.addf %209, %212 : vector<2x128xf32>
    %214 = arith.negf %213 : vector<2x128xf32>
    %215 = math.exp %214 : vector<2x128xf32>
    %cst_29 = arith.constant 1.000000e+00 : f32
    %216 = vector.broadcast %cst_29 : f32 to vector<2x128xf32>
    %217 = arith.addf %216, %215 : vector<2x128xf32>
    %218 = arith.divf %216, %217 : vector<2x128xf32>
    %219 = math.tanh %213 : vector<2x128xf32>
    %220 = arith.select %9, %219, %218 : vector<2x128xi1>, vector<2x128xf32>
    %221 = vector.extract_strided_slice %220 {offsets = [0, 0], sizes = [2, 32], strides = [1, 1]} : vector<2x128xf32> to vector<2x32xf32>
    %222 = vector.extract_strided_slice %220 {offsets = [0, 32], sizes = [2, 32], strides = [1, 1]} : vector<2x128xf32> to vector<2x32xf32>
    %223 = vector.extract_strided_slice %220 {offsets = [0, 64], sizes = [2, 32], strides = [1, 1]} : vector<2x128xf32> to vector<2x32xf32>
    %224 = vector.extract_strided_slice %220 {offsets = [0, 96], sizes = [2, 32], strides = [1, 1]} : vector<2x128xf32> to vector<2x32xf32>
    %225 = arith.mulf %222, %0 : vector<2x32xf32>
    %226 = arith.mulf %221, %223 : vector<2x32xf32>
    %227 = arith.addf %225, %226 : vector<2x32xf32>
    %228 = math.tanh %227 : vector<2x32xf32>
    %229 = arith.mulf %224, %228 : vector<2x32xf32>
    %230 = vector.broadcast %2 : vector<1x32xf32> to vector<2x32xf32>
    %231 = arith.mulf %229, %230 : vector<2x32xf32>
    %cst_30 = arith.constant dense<0.000000e+00> : vector<2xf32>
    %232 = vector.multi_reduction <add>, %231, %cst_30 [1] : vector<2x32xf32> to vector<2xf32>
    %233 = vector.shape_cast %232 : vector<2xf32> to vector<2x1xf32>
    %234 = vector.broadcast %3 : f32 to vector<2x1xf32>
    %235 = arith.addf %233, %234 : vector<2x1xf32>
    %236 = vector.broadcast %c5_i32 : i32 to vector<2x8xi32>
    %237 = arith.cmpi eq, %10, %236 : vector<2x8xi32>
    %238 = vector.shape_cast %235 : vector<2x1xf32> to vector<2x1xf32>
    %239 = vector.broadcast %238 : vector<2x1xf32> to vector<2x8xf32>
    %240 = arith.select %237, %239, %202 : vector<2x8xi1>, vector<2x8xf32>
    %c6_i32 = arith.constant 6 : i32
    %241 = arith.index_cast %c6_i32 : i32 to index
    %242 = memref.load %arg0[%241] : memref<8xf32, #tpu.memory_space<smem>>
    %243 = vector.broadcast %242 : f32 to vector<2x1xf32>
    %244 = arith.mulf %243, %235 : vector<2x1xf32>
    %245 = arith.index_cast %c6_i32 : i32 to index
    %c0_31 = arith.constant 0 : index
    %c0_32 = arith.constant 0 : index
    %246 = vector.load %arg2[%245, %c0_31, %c0_32] : memref<8x2x128xf32, #tpu.memory_space<vmem>>, vector<1x2x128xf32>
    %247 = vector.shape_cast %246 : vector<1x2x128xf32> to vector<2x128xf32>
    %248 = vector.broadcast %244 : vector<2x1xf32> to vector<2x128xf32>
    %249 = vector.broadcast %1 : vector<1x128xf32> to vector<2x128xf32>
    %250 = arith.mulf %248, %249 : vector<2x128xf32>
    %251 = arith.addf %247, %250 : vector<2x128xf32>
    %252 = arith.negf %251 : vector<2x128xf32>
    %253 = math.exp %252 : vector<2x128xf32>
    %cst_33 = arith.constant 1.000000e+00 : f32
    %254 = vector.broadcast %cst_33 : f32 to vector<2x128xf32>
    %255 = arith.addf %254, %253 : vector<2x128xf32>
    %256 = arith.divf %254, %255 : vector<2x128xf32>
    %257 = math.tanh %251 : vector<2x128xf32>
    %258 = arith.select %9, %257, %256 : vector<2x128xi1>, vector<2x128xf32>
    %259 = vector.extract_strided_slice %258 {offsets = [0, 0], sizes = [2, 32], strides = [1, 1]} : vector<2x128xf32> to vector<2x32xf32>
    %260 = vector.extract_strided_slice %258 {offsets = [0, 32], sizes = [2, 32], strides = [1, 1]} : vector<2x128xf32> to vector<2x32xf32>
    %261 = vector.extract_strided_slice %258 {offsets = [0, 64], sizes = [2, 32], strides = [1, 1]} : vector<2x128xf32> to vector<2x32xf32>
    %262 = vector.extract_strided_slice %258 {offsets = [0, 96], sizes = [2, 32], strides = [1, 1]} : vector<2x128xf32> to vector<2x32xf32>
    %263 = arith.mulf %260, %0 : vector<2x32xf32>
    %264 = arith.mulf %259, %261 : vector<2x32xf32>
    %265 = arith.addf %263, %264 : vector<2x32xf32>
    %266 = math.tanh %265 : vector<2x32xf32>
    %267 = arith.mulf %262, %266 : vector<2x32xf32>
    %268 = vector.broadcast %2 : vector<1x32xf32> to vector<2x32xf32>
    %269 = arith.mulf %267, %268 : vector<2x32xf32>
    %cst_34 = arith.constant dense<0.000000e+00> : vector<2xf32>
    %270 = vector.multi_reduction <add>, %269, %cst_34 [1] : vector<2x32xf32> to vector<2xf32>
    %271 = vector.shape_cast %270 : vector<2xf32> to vector<2x1xf32>
    %272 = vector.broadcast %3 : f32 to vector<2x1xf32>
    %273 = arith.addf %271, %272 : vector<2x1xf32>
    %274 = vector.broadcast %c6_i32 : i32 to vector<2x8xi32>
    %275 = arith.cmpi eq, %10, %274 : vector<2x8xi32>
    %276 = vector.shape_cast %273 : vector<2x1xf32> to vector<2x1xf32>
    %277 = vector.broadcast %276 : vector<2x1xf32> to vector<2x8xf32>
    %278 = arith.select %275, %277, %240 : vector<2x8xi1>, vector<2x8xf32>
    %c7_i32 = arith.constant 7 : i32
    %279 = arith.index_cast %c7_i32 : i32 to index
    %280 = memref.load %arg0[%279] : memref<8xf32, #tpu.memory_space<smem>>
    %281 = vector.broadcast %280 : f32 to vector<2x1xf32>
    %282 = arith.mulf %281, %273 : vector<2x1xf32>
    %283 = arith.index_cast %c7_i32 : i32 to index
    %c0_35 = arith.constant 0 : index
    %c0_36 = arith.constant 0 : index
    %284 = vector.load %arg2[%283, %c0_35, %c0_36] : memref<8x2x128xf32, #tpu.memory_space<vmem>>, vector<1x2x128xf32>
    %285 = vector.shape_cast %284 : vector<1x2x128xf32> to vector<2x128xf32>
    %286 = vector.broadcast %282 : vector<2x1xf32> to vector<2x128xf32>
    %287 = vector.broadcast %1 : vector<1x128xf32> to vector<2x128xf32>
    %288 = arith.mulf %286, %287 : vector<2x128xf32>
    %289 = arith.addf %285, %288 : vector<2x128xf32>
    %290 = arith.negf %289 : vector<2x128xf32>
    %291 = math.exp %290 : vector<2x128xf32>
    %cst_37 = arith.constant 1.000000e+00 : f32
    %292 = vector.broadcast %cst_37 : f32 to vector<2x128xf32>
    %293 = arith.addf %292, %291 : vector<2x128xf32>
    %294 = arith.divf %292, %293 : vector<2x128xf32>
    %295 = math.tanh %289 : vector<2x128xf32>
    %296 = arith.select %9, %295, %294 : vector<2x128xi1>, vector<2x128xf32>
    %297 = vector.extract_strided_slice %296 {offsets = [0, 0], sizes = [2, 32], strides = [1, 1]} : vector<2x128xf32> to vector<2x32xf32>
    %298 = vector.extract_strided_slice %296 {offsets = [0, 32], sizes = [2, 32], strides = [1, 1]} : vector<2x128xf32> to vector<2x32xf32>
    %299 = vector.extract_strided_slice %296 {offsets = [0, 64], sizes = [2, 32], strides = [1, 1]} : vector<2x128xf32> to vector<2x32xf32>
    %300 = vector.extract_strided_slice %296 {offsets = [0, 96], sizes = [2, 32], strides = [1, 1]} : vector<2x128xf32> to vector<2x32xf32>
    %301 = arith.mulf %298, %0 : vector<2x32xf32>
    %302 = arith.mulf %297, %299 : vector<2x32xf32>
    %303 = arith.addf %301, %302 : vector<2x32xf32>
    %304 = math.tanh %303 : vector<2x32xf32>
    %305 = arith.mulf %300, %304 : vector<2x32xf32>
    %306 = vector.broadcast %2 : vector<1x32xf32> to vector<2x32xf32>
    %307 = arith.mulf %305, %306 : vector<2x32xf32>
    %cst_38 = arith.constant dense<0.000000e+00> : vector<2xf32>
    %308 = vector.multi_reduction <add>, %307, %cst_38 [1] : vector<2x32xf32> to vector<2xf32>
    %309 = vector.shape_cast %308 : vector<2xf32> to vector<2x1xf32>
    %310 = vector.broadcast %3 : f32 to vector<2x1xf32>
    %311 = arith.addf %309, %310 : vector<2x1xf32>
    %312 = vector.broadcast %c7_i32 : i32 to vector<2x8xi32>
    %313 = arith.cmpi eq, %10, %312 : vector<2x8xi32>
    %314 = vector.shape_cast %311 : vector<2x1xf32> to vector<2x1xf32>
    %315 = vector.broadcast %314 : vector<2x1xf32> to vector<2x8xf32>
    %316 = arith.select %313, %315, %278 : vector<2x8xi1>, vector<2x8xf32>
    %c8_i32 = arith.constant 8 : i32
    %c0_39 = arith.constant 0 : index
    %c0_40 = arith.constant 0 : index
    %317 = vector.load %arg6[%c0_39, %c0_40] : memref<2x8xf32, #tpu.memory_space<vmem>>, vector<2x8xf32>
    tpu.vector_store %arg6[%c0_39, %c0_40], %316 {strides = array<i32>} : memref<2x8xf32, #tpu.memory_space<vmem>>, vector<2x8xf32>,
    return
  }
}

</mosaic_0001>

<bundles_post_ra>
// kernel: tpu_custom_call.1
= control target key start
LH: loop header
LB: loop body
LE: loop exit
PB: predicated region body
PF: predicated region fallthrough
CT: control target
= control target key end

     0   :  { %12 = vsyncpa [#allocation6], 0  ;;  %s766_s0 = inlined_call_operand.vmem [shape: f32[8], index: 0, kind: input, shape index: {}]   ;;  %s767_s1 = inlined_call_operand.<no memory space> [shape: f32[1], index: 1, kind: input, shape index: {}]   ;;  %s768_s2 = inlined_call_operand.hbm [shape: f32[8,2,128], index: 2, kind: input, shape index: {}]   ;;  %s769_s3 = inlined_call_operand.vmem [shape: f32[2,32], index: 3, kind: input, shape index: {}]   ;;  %s770_s4 = inlined_call_operand.vmem [shape: f32[1,128], index: 4, kind: input, shape index: {}]   ;;  %s771_s5 = inlined_call_operand.vmem [shape: f32[1,32], index: 5, kind: input, shape index: {}]   ;;  %s772_s6 = inlined_call_operand.hbm [shape: f32[2,8], index: 6, kind: output, shape index: {}]  }
   0x1   :  { %13 = vsyncpa [#allocation4], 0 }
   0x2   :  { %14 = vsyncpa [#allocation5], 0  ;;  %s21_s23 = sshll.u32 %s766_s0, 4  ;;  %s22_s23 = int_to_ptr.vmem [resolvable:$true] %s21_s23 }
   0x3   :  { %s530_s24 = scalar_lea.vmem %s22_s23, 16  ;;  %p535_p1 = scmp.lt.s32.totalorder %s22_s23, %s22_s23 }
   0x4   :  { %p531_p0 = scmp.ne.s32.totalorder %s22_s23, %s530_s24  ;;  %p536_p2 = scmp.lt.s32.totalorder %s530_s24, %s530_s24 }
   0x6   :  { %p537_p3 = por %p536_p2, %p535_p1 }
   0x8   :  { %p538_p4 = pnand %p537_p3, %p531_p0 }
   0xa   :  { %541 = shalt.err (!%p538_p4)
}
   0xb   :  { %s588_s25 = smov [#allocation3]   ;;  %s589_s26 = smov [#allocation7]  }
   0xc   :  { %24 = dma.vmem_to_smem %s22_s23, 16, %s588_s25, [#allocation6]  }
   0xd   :  { %s32_s27 = sshll.u32 %s589_s26, 4  ;;  %s33_s27 = int_to_ptr.vmem [resolvable:$true] %s32_s27 }
   0xe   :  { %s550_s28 = scalar_lea.vmem %s33_s27, 256  ;;  %p555_p6 = scmp.lt.s32.totalorder %s33_s27, %s33_s27 }
   0xf   :  { %p551_p5 = scmp.ne.s32.totalorder %s33_s27, %s550_s28  ;;  %p556_p7 = scmp.lt.s32.totalorder %s550_s28, %s550_s28 }
  0x11   :  { %p557_p8 = por %p556_p7, %p555_p6 }
  0x13   :  { %p558_p9 = pnand %p557_p8, %p551_p5 }
  0x15   :  { %561 = shalt.err (!%p558_p9)
}
  0x16   :  { %s590_s0 = smov 32   ;;  %s591_s29 = smov 2  }
  0x17   :  { %38 = dma.hbm_to_vmem [thread:$0]  %s768_s2, 256, %s33_s27, [#allocation4], %s590_s0, %s590_s0, %s591_s29  }
  0x18   :  { %582 = dma.done.wait [#allocation6], 16  }
  0x19   :  { %583 = vsyncadd [#allocation6], 4294967280 }
  0x1a   :  { %584 = dma.done.wait [#allocation4], 256  }
  0x1b   :  { %585 = vsyncadd [#allocation4], 4294967040 }
  0x1c   :  { %51 = sfence }
  0x1d   :  { %s61_s8 = sld [smem:[#allocation3]]  ;;  %v641_v0 = vld [vmem:[%s770_s4] ss:$0 sm:$0xff]  ;;  %v56_v9 = vlaneseq  ;;  %s592_s2 = smov 64   ;;  %vm115_vm3 = vcmask 254976   ;;  %v675_v30 = vstv %s767_s1  ;;  %vm424_vm12 = vcmask 58368  }
  0x1e   :  { %v64_v3 = vld [vmem:[#allocation7] sm:$0x3]  ;;  %s593_s14 = smov 96   ;;  %v127_v35 = vld [vmem:[#allocation7 + $0x2] sm:$0x3]  ;;  %s447_s1 = sld [smem:[#allocation3 + $0x2]] }
  0x1f   :  { %v644_v10 = vand.u32 127, %v56_v9  ;;  %v52_v15 = vld [vmem:[%s769_s3] sm:$0x3]  ;;  %s445_s3 = sld [smem:[#allocation3 + $0x1]]  ;;  %v170_v61 = vld [vmem:[#allocation7 + $0x4] sm:$0x3] }
  0x20   :  { %v444_v18 = vld [vmem:[%s771_s5] ss:$0 sm:$0xff]  ;;  %s449_s16 = sld [smem:[#allocation3 + $0x3]]  ;;  %s594_s21 = smov [#allocation8]  }
  0x21   :  { %vm58_vm0 = vcmp.ge.s32.totalorder %v644_v10, 64  ;;  %vm59_vm1 = vcmp.lt.s32.totalorder %v644_v10, 96  ;;  %vm121_vm4 = vcmp.eq.s32.totalorder %v644_v10, 0  ;;  %vm164_vm5 = vcmp.eq.s32.totalorder %v644_v10, 1  ;;  %s451_s17 = sld [smem:[#allocation3 + $0x4]]  ;;  %s432_s22 = sshll.u32 %s594_s21, 4  ;;  %s433_s22 = int_to_ptr.vmem [resolvable:$true] %s432_s22 }
  0x22   :  { %vm648_vm2 = vmand %vm58_vm0, %vm59_vm1  ;;  %vm207_vm6 = vcmp.eq.s32.totalorder %v644_v10, 2  ;;  %vm250_vm7 = vcmp.eq.s32.totalorder %v644_v10, 3  ;;  %s453_s18 = sld [smem:[#allocation3 + $0x5]]  ;;  %vm293_vm8 = vcmp.eq.s32.totalorder %v644_v10, 4  ;;  %vm336_vm9 = vcmp.eq.s32.totalorder %v644_v10, 5  ;;  %s562_s23 = scalar_lea.vmem %s433_s22, 32 }
  0x23   :  { %v62_v1 = vstv %s61_s8  ;;  %s455_s19 = sld [smem:[#allocation3 + $0x6]]  ;;  %vm379_vm10 = vcmp.eq.s32.totalorder %v644_v10, 6  ;;  %vm422_vm11 = vcmp.eq.s32.totalorder %v644_v10, 7  ;;  %p563_p10 = scmp.ne.s32.totalorder %s433_s22, %s562_s23 }
  0x24   :  { %v63_v2 = vmul.f32 0.0, %v62_v1  ;;  %v167_v55 = vstv %s447_s1  ;;  %s457_s20 = sld [smem:[#allocation3 + $0x7]]  ;;  %p567_p11 = scmp.lt.s32.totalorder %s433_s22, %s433_s22 }
  0x25   :  { %v124_v31 = vstv %s445_s3  ;;  %p568_p12 = scmp.lt.s32.totalorder %s562_s23, %s562_s23 }
  0x26   :  { %v71_v4 = vmul.f32 %v641_v0, %v63_v2 }
  0x27   :  { %p569_p13 = por %p568_p12, %p567_p11 }
  0x28   :  { %v72_v5 = vadd.f32 %v71_v4, %v64_v3 }
  0x29   :  { %p570_p0 = pnand %p569_p13, %p563_p10 }
  0x2a   :  { %v443_v6 = vmul.f32 -1.442695, %v72_v5 }
  0x2c   :  { %466 = vpow2.f32 %v443_v6 }
  0x2d   :  { %468 = vtanh.f32 %v72_v5 }
  0x39   :  { %v467_v7 = vpop.eup %466 }
  0x3a   :  { %v76_v8 = vadd.f32 1.0, %v467_v7  ;;  %v469_v11 = vpop.eup %468 }
  0x3c   :  { %470 = vrcp.f32 %v76_v8 }
  0x49   :  { %v471_v13 = vpop.eup %470 }
  0x4a   :  { %v80_v14 = vsel %vm648_vm2, %v469_v11, %v471_v13 }
  0x4b   :  { %87 = vrot.lane.b32.xlu0 %v80_v14, %s592_s2 }
  0x4f   :  { %82 = vrot.lane.b32.xlu0 %v52_v15, %s590_s0 }
  0x53   :  { %107 = vrot.lane.b32.xlu0 %v444_v18, %s593_s14 }
  0xbd   :  { %v88_v16 = vpop.permute.xlu0 %87 }
  0xbe   :  { %v90_v17 = vmul.f32 %v88_v16, %v80_v14 }
  0xc0   :  { %92 = vrot.lane.b32.xlu1 %v90_v17, %s590_s0 }
  0xc1   :  { %v663_v19 = vpop.permute.xlu0 %82 }
  0xc2   :  { %v85_v20 = vmul.f32 %v663_v19, %v80_v14 }
  0xc5   :  { %v667_v25 = vpop.permute.xlu0 %107 }
 0x132   :  { %v93_v21 = vpop.permute.xlu1 %92 }
 0x133   :  { %v95_v22 = vadd.f32 %v93_v21, %v85_v20  ;;  %v210_v21 = vstv %s449_s16 }
 0x135   :  { %472 = vtanh.f32 %v95_v22 }
 0x142   :  { %v473_v23 = vpop.eup %472 }
 0x143   :  { %98 = vrot.lane.b32.xlu1 %v473_v23, %s592_s2 }
 0x1b5   :  { %v99_v24 = vpop.permute.xlu1 %98 }
 0x1b6   :  { %v101_v26 = vmul.f32 %v99_v24, %v80_v14 }
 0x1b8   :  { %v110_v27 = vmul.f32 %v667_v25, %v101_v26 }
 0x1ba   :  { %112 = vrot.lane.b32.xlu1 %v110_v27, %s590_s0  ;;  %v213_v27 = vld [vmem:[#allocation7 + $0x6] sm:$0x3] }
 0x22c   :  { %v113_v28 = vpop.permute.xlu1 %112 }
 0x22d   :  { %v116_v29 = vsel %vm115_vm3, %v113_v28, 0.0 }
 0x22e   :  { %117 = vadd.xlane.f32.xlu0 %v116_v29 }
 0x2b7   :  { %v118_v32 = vpop.xlane.xlu0 %117 }
 0x2b8   :  { %v120_v33 = vadd.f32 %v675_v30, %v118_v32 }
 0x2ba   :  { %v125_v34 = vmul.f32 %v124_v31, %v120_v33  ;;  %v122_v58 = vsel %vm121_vm4, %v120_v33, 0.0 }
 0x2bc   :  { %v128_v36 = vmul.f32 %v641_v0, %v125_v34 }
 0x2be   :  { %v129_v37 = vadd.f32 %v128_v36, %v127_v35 }
 0x2c0   :  { %v446_v38 = vmul.f32 -1.442695, %v129_v37 }
 0x2c2   :  { %474 = vpow2.f32 %v446_v38 }
 0x2c3   :  { %476 = vtanh.f32 %v129_v37 }
 0x2cf   :  { %v475_v39 = vpop.eup %474 }
 0x2d0   :  { %v133_v40 = vadd.f32 1.0, %v475_v39  ;;  %v477_v41 = vpop.eup %476 }
 0x2d2   :  { %478 = vrcp.f32 %v133_v40 }
 0x2df   :  { %v479_v42 = vpop.eup %478 }
 0x2e0   :  { %v137_v43 = vsel %vm648_vm2, %v477_v41, %v479_v42 }
 0x2e1   :  { %140 = vrot.lane.b32.xlu1 %v137_v43, %s592_s2  ;;  %v138_v46 = vmul.f32 %v137_v43, %v663_v19 }
 0x353   :  { %v141_v44 = vpop.permute.xlu1 %140 }
 0x354   :  { %v143_v45 = vmul.f32 %v141_v44, %v137_v43 }
 0x356   :  { %145 = vrot.lane.b32.xlu1 %v143_v45, %s590_s0 }
 0x3c8   :  { %v146_v47 = vpop.permute.xlu1 %145 }
 0x3c9   :  { %v148_v48 = vadd.f32 %v146_v47, %v138_v46 }
 0x3cb   :  { %480 = vtanh.f32 %v148_v48  ;;  %v253_v48 = vstv %s451_s17 }
 0x3d8   :  { %v481_v49 = vpop.eup %480 }
 0x3d9   :  { %151 = vrot.lane.b32.xlu1 %v481_v49, %s592_s2 }
 0x44b   :  { %v152_v50 = vpop.permute.xlu1 %151 }
 0x44c   :  { %v154_v51 = vmul.f32 %v152_v50, %v137_v43 }
 0x44e   :  { %v155_v52 = vmul.f32 %v154_v51, %v667_v25 }
 0x450   :  { %157 = vrot.lane.b32.xlu1 %v155_v52, %s590_s0 }
 0x4c2   :  { %v158_v53 = vpop.permute.xlu1 %157 }
 0x4c3   :  { %v160_v54 = vsel %vm115_vm3, %v158_v53, 0.0  ;;  %v256_v53 = vld [vmem:[#allocation7 + $0x8] sm:$0x3] }
 0x4c4   :  { %161 = vadd.xlane.f32.xlu1 %v160_v54 }
 0x54d   :  { %v162_v56 = vpop.xlane.xlu1 %161 }
 0x54e   :  { %v163_v57 = vadd.f32 %v162_v56, %v675_v30 }
 0x550   :  { %v165_v59 = vsel %vm164_vm5, %v163_v57, %v122_v58  ;;  %v168_v60 = vmul.f32 %v167_v55, %v163_v57 }
 0x552   :  { %v171_v62 = vmul.f32 %v641_v0, %v168_v60 }
 0x554   :  { %v172_v63 = vadd.f32 %v171_v62, %v170_v61 }
 0x556   :  { %v448_v1 = vmul.f32 -1.442695, %v172_v63 }
 0x558   :  { %482 = vpow2.f32 %v448_v1 }
 0x559   :  { %484 = vtanh.f32 %v172_v63 }
 0x565   :  { %v483_v2 = vpop.eup %482 }
 0x566   :  { %v176_v3 = vadd.f32 1.0, %v483_v2  ;;  %v485_v4 = vpop.eup %484 }
 0x568   :  { %486 = vrcp.f32 %v176_v3 }
 0x575   :  { %v487_v5 = vpop.eup %486 }
 0x576   :  { %v180_v6 = vsel %vm648_vm2, %v485_v4, %v487_v5 }
 0x577   :  { %183 = vrot.lane.b32.xlu0 %v180_v6, %s592_s2  ;;  %v181_v9 = vmul.f32 %v180_v6, %v663_v19 }
 0x5e9   :  { %v184_v7 = vpop.permute.xlu0 %183 }
 0x5ea   :  { %v186_v8 = vmul.f32 %v184_v7, %v180_v6 }
 0x5ec   :  { %188 = vrot.lane.b32.xlu1 %v186_v8, %s590_s0 }
 0x65e   :  { %v189_v11 = vpop.permute.xlu1 %188 }
 0x65f   :  { %v191_v13 = vadd.f32 %v189_v11, %v181_v9  ;;  %v296_v11 = vstv %s453_s18 }
 0x661   :  { %488 = vtanh.f32 %v191_v13 }
 0x66e   :  { %v489_v14 = vpop.eup %488 }
 0x66f   :  { %194 = vrot.lane.b32.xlu0 %v489_v14, %s592_s2 }
 0x6e1   :  { %v195_v15 = vpop.permute.xlu0 %194 }
 0x6e2   :  { %v197_v16 = vmul.f32 %v195_v15, %v180_v6 }
 0x6e4   :  { %v198_v17 = vmul.f32 %v197_v16, %v667_v25 }
 0x6e6   :  { %200 = vrot.lane.b32.xlu0 %v198_v17, %s590_s0  ;;  %v299_v17 = vld [vmem:[#allocation7 + $0xa] sm:$0x3] }
 0x758   :  { %v201_v18 = vpop.permute.xlu0 %200 }
 0x759   :  { %v203_v20 = vsel %vm115_vm3, %v201_v18, 0.0 }
 0x75a   :  { %204 = vadd.xlane.f32.xlu0 %v203_v20 }
 0x7e3   :  { %v205_v22 = vpop.xlane.xlu0 %204 }
 0x7e4   :  { %v206_v23 = vadd.f32 %v205_v22, %v675_v30 }
 0x7e6   :  { %v208_v24 = vsel %vm207_vm6, %v206_v23, %v165_v59  ;;  %v211_v26 = vmul.f32 %v210_v21, %v206_v23 }
 0x7e8   :  { %v214_v28 = vmul.f32 %v641_v0, %v211_v26 }
 0x7ea   :  { %v215_v29 = vadd.f32 %v214_v28, %v213_v27 }
 0x7ec   :  { %v450_v31 = vmul.f32 -1.442695, %v215_v29 }
 0x7ee   :  { %490 = vpow2.f32 %v450_v31 }
 0x7ef   :  { %492 = vtanh.f32 %v215_v29 }
 0x7fb   :  { %v491_v32 = vpop.eup %490 }
 0x7fc   :  { %v219_v33 = vadd.f32 1.0, %v491_v32  ;;  %v493_v34 = vpop.eup %492 }
 0x7fe   :  { %494 = vrcp.f32 %v219_v33 }
 0x80b   :  { %v495_v35 = vpop.eup %494 }
 0x80c   :  { %v223_v36 = vsel %vm648_vm2, %v493_v34, %v495_v35 }
 0x80d   :  { %226 = vrot.lane.b32.xlu1 %v223_v36, %s592_s2  ;;  %v224_v39 = vmul.f32 %v223_v36, %v663_v19 }
 0x87f   :  { %v227_v37 = vpop.permute.xlu1 %226 }
 0x880   :  { %v229_v38 = vmul.f32 %v227_v37, %v223_v36 }
 0x882   :  { %231 = vrot.lane.b32.xlu1 %v229_v38, %s590_s0 }
 0x8f4   :  { %v232_v40 = vpop.permute.xlu1 %231 }
 0x8f5   :  { %v234_v41 = vadd.f32 %v232_v40, %v224_v39  ;;  %v339_v40 = vstv %s455_s19 }
 0x8f7   :  { %496 = vtanh.f32 %v234_v41 }
 0x904   :  { %v497_v42 = vpop.eup %496 }
 0x905   :  { %237 = vrot.lane.b32.xlu1 %v497_v42, %s592_s2 }
 0x977   :  { %v238_v43 = vpop.permute.xlu1 %237 }
 0x978   :  { %v240_v44 = vmul.f32 %v238_v43, %v223_v36 }
 0x97a   :  { %v241_v45 = vmul.f32 %v240_v44, %v667_v25 }
 0x97c   :  { %243 = vrot.lane.b32.xlu1 %v241_v45, %s590_s0  ;;  %v342_v45 = vld [vmem:[#allocation7 + $0xc] sm:$0x3] }
 0x9ee   :  { %v244_v46 = vpop.permute.xlu1 %243 }
 0x9ef   :  { %v246_v47 = vsel %vm115_vm3, %v244_v46, 0.0 }
 0x9f0   :  { %247 = vadd.xlane.f32.xlu1 %v246_v47 }
 0xa79   :  { %v248_v49 = vpop.xlane.xlu1 %247 }
 0xa7a   :  { %v249_v50 = vadd.f32 %v248_v49, %v675_v30 }
 0xa7c   :  { %v251_v51 = vsel %vm250_vm7, %v249_v50, %v208_v24  ;;  %v254_v52 = vmul.f32 %v253_v48, %v249_v50 }
 0xa7e   :  { %v257_v54 = vmul.f32 %v641_v0, %v254_v52 }
 0xa80   :  { %v258_v55 = vadd.f32 %v257_v54, %v256_v53 }
 0xa82   :  { %v452_v56 = vmul.f32 -1.442695, %v258_v55 }
 0xa84   :  { %498 = vpow2.f32 %v452_v56 }
 0xa85   :  { %500 = vtanh.f32 %v258_v55 }
 0xa91   :  { %v499_v57 = vpop.eup %498 }
 0xa92   :  { %v262_v58 = vadd.f32 1.0, %v499_v57  ;;  %v501_v59 = vpop.eup %500 }
 0xa94   :  { %502 = vrcp.f32 %v262_v58 }
 0xaa1   :  { %v503_v60 = vpop.eup %502 }
 0xaa2   :  { %v266_v61 = vsel %vm648_vm2, %v501_v59, %v503_v60 }
 0xaa3   :  { %269 = vrot.lane.b32.xlu0 %v266_v61, %s592_s2  ;;  %v267_v1 = vmul.f32 %v266_v61, %v663_v19 }
 0xb15   :  { %v270_v62 = vpop.permute.xlu0 %269 }
 0xb16   :  { %v272_v63 = vmul.f32 %v270_v62, %v266_v61 }
 0xb18   :  { %274 = vrot.lane.b32.xlu0 %v272_v63, %s590_s0 }
 0xb8a   :  { %v275_v2 = vpop.permute.xlu0 %274 }
 0xb8b   :  { %v277_v3 = vadd.f32 %v275_v2, %v267_v1  ;;  %v382_v2 = vstv %s457_s20 }
 0xb8d   :  { %504 = vtanh.f32 %v277_v3 }
 0xb9a   :  { %v505_v4 = vpop.eup %504 }
 0xb9b   :  { %280 = vrot.lane.b32.xlu0 %v505_v4, %s592_s2 }
 0xc0d   :  { %v281_v5 = vpop.permute.xlu0 %280 }
 0xc0e   :  { %v283_v6 = vmul.f32 %v281_v5, %v266_v61 }
 0xc10   :  { %v284_v7 = vmul.f32 %v283_v6, %v667_v25 }
 0xc12   :  { %286 = vrot.lane.b32.xlu1 %v284_v7, %s590_s0  ;;  %v385_v7 = vld [vmem:[#allocation7 + $0xe] sm:$0x3] }
 0xc84   :  { %v287_v8 = vpop.permute.xlu1 %286 }
 0xc85   :  { %v289_v9 = vsel %vm115_vm3, %v287_v8, 0.0 }
 0xc86   :  { %290 = vadd.xlane.f32.xlu0 %v289_v9 }
 0xd0f   :  { %v291_v13 = vpop.xlane.xlu0 %290 }
 0xd10   :  { %v292_v14 = vadd.f32 %v291_v13, %v675_v30 }
 0xd12   :  { %v294_v15 = vsel %vm293_vm8, %v292_v14, %v251_v51  ;;  %v297_v16 = vmul.f32 %v296_v11, %v292_v14 }
 0xd14   :  { %v300_v18 = vmul.f32 %v641_v0, %v297_v16 }
 0xd16   :  { %v301_v20 = vadd.f32 %v300_v18, %v299_v17 }
 0xd18   :  { %v454_v21 = vmul.f32 -1.442695, %v301_v20 }
 0xd1a   :  { %506 = vpow2.f32 %v454_v21 }
 0xd1b   :  { %508 = vtanh.f32 %v301_v20 }
 0xd27   :  { %v507_v22 = vpop.eup %506 }
 0xd28   :  { %v305_v23 = vadd.f32 1.0, %v507_v22  ;;  %v509_v24 = vpop.eup %508 }
 0xd2a   :  { %510 = vrcp.f32 %v305_v23 }
 0xd37   :  { %v511_v26 = vpop.eup %510 }
 0xd38   :  { %v309_v27 = vsel %vm648_vm2, %v509_v24, %v511_v26 }
 0xd39   :  { %312 = vrot.lane.b32.xlu1 %v309_v27, %s592_s2  ;;  %v310_v31 = vmul.f32 %v309_v27, %v663_v19 }
 0xdab   :  { %v313_v28 = vpop.permute.xlu1 %312 }
 0xdac   :  { %v315_v29 = vmul.f32 %v313_v28, %v309_v27 }
 0xdae   :  { %317 = vrot.lane.b32.xlu1 %v315_v29, %s590_s0 }
 0xe20   :  { %v318_v32 = vpop.permute.xlu1 %317 }
 0xe21   :  { %v320_v33 = vadd.f32 %v318_v32, %v310_v31 }
 0xe23   :  { %512 = vtanh.f32 %v320_v33 }
 0xe30   :  { %v513_v34 = vpop.eup %512 }
 0xe31   :  { %323 = vrot.lane.b32.xlu1 %v513_v34, %s592_s2 }
 0xea3   :  { %v324_v35 = vpop.permute.xlu1 %323 }
 0xea4   :  { %v326_v36 = vmul.f32 %v324_v35, %v309_v27 }
 0xea6   :  { %v327_v37 = vmul.f32 %v326_v36, %v667_v25 }
 0xea8   :  { %329 = vrot.lane.b32.xlu1 %v327_v37, %s590_s0 }
 0xf1a   :  { %v330_v38 = vpop.permute.xlu1 %329 }
 0xf1b   :  { %v332_v39 = vsel %vm115_vm3, %v330_v38, 0.0 }
 0xf1c   :  { %333 = vadd.xlane.f32.xlu0 %v332_v39 }
 0xfa5   :  { %v334_v41 = vpop.xlane.xlu0 %333 }
 0xfa6   :  { %v335_v42 = vadd.f32 %v334_v41, %v675_v30 }
 0xfa8   :  { %v337_v43 = vsel %vm336_vm9, %v335_v42, %v294_v15  ;;  %v340_v44 = vmul.f32 %v339_v40, %v335_v42 }
 0xfaa   :  { %v343_v46 = vmul.f32 %v641_v0, %v340_v44 }
 0xfac   :  { %v344_v47 = vadd.f32 %v343_v46, %v342_v45 }
 0xfae   :  { %v456_v48 = vmul.f32 -1.442695, %v344_v47 }
 0xfb0   :  { %514 = vpow2.f32 %v456_v48 }
 0xfb1   :  { %516 = vtanh.f32 %v344_v47 }
 0xfbd   :  { %v515_v49 = vpop.eup %514 }
 0xfbe   :  { %v348_v50 = vadd.f32 1.0, %v515_v49  ;;  %v517_v51 = vpop.eup %516 }
 0xfc0   :  { %518 = vrcp.f32 %v348_v50 }
 0xfcd   :  { %v519_v52 = vpop.eup %518 }
 0xfce   :  { %v352_v53 = vsel %vm648_vm2, %v517_v51, %v519_v52 }
 0xfcf   :  { %355 = vrot.lane.b32.xlu1 %v352_v53, %s592_s2  ;;  %v353_v56 = vmul.f32 %v352_v53, %v663_v19 }
0x1041   :  { %v356_v54 = vpop.permute.xlu1 %355 }
0x1042   :  { %v358_v55 = vmul.f32 %v356_v54, %v352_v53 }
0x1044   :  { %360 = vrot.lane.b32.xlu0 %v358_v55, %s590_s0 }
0x10b6   :  { %v361_v57 = vpop.permute.xlu0 %360 }
0x10b7   :  { %v363_v58 = vadd.f32 %v361_v57, %v353_v56 }
0x10b9   :  { %520 = vtanh.f32 %v363_v58 }
0x10c6   :  { %v521_v59 = vpop.eup %520 }
0x10c7   :  { %366 = vrot.lane.b32.xlu1 %v521_v59, %s592_s2 }
0x1139   :  { %v367_v60 = vpop.permute.xlu1 %366 }
0x113a   :  { %v369_v61 = vmul.f32 %v367_v60, %v352_v53 }
0x113c   :  { %v370_v62 = vmul.f32 %v369_v61, %v667_v25 }
0x113e   :  { %372 = vrot.lane.b32.xlu1 %v370_v62, %s590_s0 }
0x11b0   :  { %v373_v63 = vpop.permute.xlu1 %372 }
0x11b1   :  { %v375_v1 = vsel %vm115_vm3, %v373_v63, 0.0 }
0x11b2   :  { %376 = vadd.xlane.f32.xlu1 %v375_v1 }
0x123b   :  { %v377_v3 = vpop.xlane.xlu1 %376 }
0x123c   :  { %v378_v4 = vadd.f32 %v377_v3, %v675_v30 }
0x123e   :  { %v383_v5 = vmul.f32 %v382_v2, %v378_v4  ;;  %v380_v6 = vsel %vm379_vm10, %v378_v4, %v337_v43 }
0x1240   :  { %v386_v8 = vmul.f32 %v641_v0, %v383_v5 }
0x1242   :  { %v387_v9 = vadd.f32 %v386_v8, %v385_v7 }
0x1244   :  { %v458_v11 = vmul.f32 -1.442695, %v387_v9 }
0x1246   :  { %522 = vpow2.f32 %v458_v11 }
0x1247   :  { %524 = vtanh.f32 %v387_v9 }
0x1253   :  { %v523_v13 = vpop.eup %522 }
0x1254   :  { %v391_v14 = vadd.f32 1.0, %v523_v13  ;;  %v525_v15 = vpop.eup %524 }
0x1256   :  { %526 = vrcp.f32 %v391_v14 }
0x1263   :  { %v527_v16 = vpop.eup %526 }
0x1264   :  { %v395_v17 = vsel %vm648_vm2, %v525_v15, %v527_v16 }
0x1265   :  { %398 = vrot.lane.b32.xlu0 %v395_v17, %s592_s2  ;;  %v396_v0 = vmul.f32 %v395_v17, %v663_v19 }
0x12d7   :  { %v399_v18 = vpop.permute.xlu0 %398 }
0x12d8   :  { %v401_v20 = vmul.f32 %v399_v18, %v395_v17 }
0x12da   :  { %403 = vrot.lane.b32.xlu0 %v401_v20, %s590_s0 }
0x134c   :  { %v404_v21 = vpop.permute.xlu0 %403 }
0x134d   :  { %v406_v22 = vadd.f32 %v404_v21, %v396_v0 }
0x134f   :  { %528 = vtanh.f32 %v406_v22 }
0x135c   :  { %v529_v23 = vpop.eup %528 }
0x135d   :  { %409 = vrot.lane.b32.xlu0 %v529_v23, %s592_s2 }
0x13cf   :  { %v410_v24 = vpop.permute.xlu0 %409 }
0x13d0   :  { %v412_v26 = vmul.f32 %v410_v24, %v395_v17 }
0x13d2   :  { %v413_v27 = vmul.f32 %v412_v26, %v667_v25 }
0x13d4   :  { %415 = vrot.lane.b32.xlu0 %v413_v27, %s590_s0 }
0x1446   :  { %v416_v12 = vpop.permute.xlu0 %415 }
0x1447   :  { %v418_v28 = vsel %vm115_vm3, %v416_v12, 0.0 }
0x1448   :  { %419 = vadd.xlane.f32.xlu0 %v418_v28 }
0x14d1   :  { %v420_v29 = vpop.xlane.xlu0 %419 }
0x14d2   :  { %v421_v19 = vadd.f32 %v420_v29, %v675_v30 }
0x14d4   :  { %v423_v31 = vsel %vm422_vm11, %v421_v19, %v380_v6 }
0x14d5   :  { %425 = vst.msk [vmem:[#allocation8] sm:$0x3] %vm424_vm12, %v423_v31 }
0x14d6   :  { %573 = shalt.err (!%p570_p0)
}
0x14d7   :  { %435 = dma.vmem_to_hbm [thread:$0]  %s433_s22, 32, %s772_s6, [#allocation5]  }
0x14d8   :  { %586 = dma.done.wait [#allocation5], 32  }
0x14d9   :  { %587 = vsyncadd [#allocation5], 4294967264 }
0x14da   :  { %439 = vsyncpa [#allocation4], 1 }
0x14db   :  { %440 = vsyncpa [#allocation5], 1 }
0x14dc   :  { %441 = vsyncpa [#allocation6], 1 }

</bundles_post_ra>
